<compile_context>
chip_gen: v7x
topology: tpu7x:2x2x1
jax: 0.10.0
libtpu: 0.0.40
codegen_flags: <defaults>
</compile_context>

<pallas_src>
import jax
import jax.numpy as jnp
from jax.experimental import pallas as pl
from jax.experimental.pallas import tpu as pltpu


# ----------------------------------------------------------------------------
# Demo Pallas kernel: identity pass-through (represents the empty forward body).
# ----------------------------------------------------------------------------
def _identity_kernel(x_ref, o_ref):
    # The reference forward does nothing; the only "work" here is moving the
    # tile through VMEM untouched.
    o_ref[...] = x_ref[...]


def _choose_lane_width(total_elems: int, fallback: int) -> int:
    """Pick the widest lane-dense last dim (multiple of 128, capped at 1024)."""
    for lanes in (1024, 512, 256, 128):
        if total_elems % lanes == 0:
            return lanes
    return fallback


def identity_pallas(x: jax.Array) -> jax.Array:
    """Streams `x` through a tiled, lane-dense Pallas TPU identity kernel."""
    orig_shape = x.shape
    total = x.size
    lanes = _choose_lane_width(total, orig_shape[-1])
    rows = total // lanes
    x2d = x.reshape(rows, lanes)

    # Tile rows; <= ~2 MiB per f32 tile keeps 4 live double-buffered tiles well
    # inside the default scoped VMEM on every generation (v5e/v6e/v7x).
    tile_r = min(rows, 512)
    grid = (pl.cdiv(rows, tile_r),)

    out2d = pl.pallas_call(
        _identity_kernel,
        out_shape=jax.ShapeDtypeStruct(x2d.shape, x2d.dtype),
        grid=grid,
        in_specs=[pl.BlockSpec((tile_r, lanes), lambda i: (i, 0))],
        out_specs=pl.BlockSpec((tile_r, lanes), lambda i: (i, 0)),
        # Output aliases the input buffer: no second HBM array allocated or
        # written back; halves HBM traffic for this mem-bound stream.
        input_output_aliases={0: 0},
        compiler_params=pltpu.CompilerParams(
            dimension_semantics=("parallel",)
        ),
    )(x2d)
    return out2d.reshape(orig_shape)


identity_pallas_jit = jax.jit(identity_pallas)


# ----------------------------------------------------------------------------
# Module-equivalent wrapper (exact semantics of the PyTorch forward).
# ----------------------------------------------------------------------------
class AdversialLoss:
    """JAX equivalent of the (empty) PyTorch Adversial_loss module.

    The faithful forward launches no kernel at all: the PyTorch forward body
    is `pass`, so the correct "optimization" is zero device work.
    """

    def __init__(self):
        # The PyTorch __init__ defines no parameters.
        pass

    def forward(self):
        # Exact semantics: torch forward body is `pass` -> returns None.
        return None

    __call__ = forward


if __name__ == "__main__":
    # Deterministic small input (only used to exercise the demo Pallas kernel;
    # the module's forward itself takes no inputs).
    key = jax.random.PRNGKey(0)
    x = jax.random.normal(key, (2, 4, 16, 16), dtype=jnp.float32)  # NCHW

    # 1) Faithful module forward: returns None, launches nothing, exactly like
    #    PyTorch.
    module = AdversialLoss()
    result = module()
    assert result is None, "Adversial_loss.forward must return None"

    # 2) Run the demo Pallas identity kernel once and block on it.
    y = identity_pallas_jit(x)
    jax.block_until_ready(y)

    # Sanity: identity kernel must be exact.
    assert y.shape == x.shape and y.dtype == x.dtype
    assert jnp.array_equal(y, x)

    print("KERNEL_OK")
</pallas_src>

<mosaic_0001>
module attributes {stable_mosaic.version = 11 : i64} {
  func.func @_identity_kernel(%arg0: i32, %arg1: memref<2x1024xf32, #tpu.memory_space<vmem>>, %arg2: memref<2x1024xf32, #tpu.memory_space<vmem>>) attributes {dimension_semantics = [#tpu.dimension_semantics<parallel>], iteration_bounds = array<i64: 1>, scalar_prefetch = 0 : i64, scratch_operands = 0 : i64, tpu.core_type = #tpu.core_type<tc>, window_params = [{transform_indices = @transform_0, window_bounds = array<i64: 2, 1024>}, {transform_indices = @transform_1, window_bounds = array<i64: 2, 1024>}]} {
    %c0 = arith.constant 0 : index
    %c0_0 = arith.constant 0 : index
    %0 = vector.load %arg1[%c0, %c0_0] : memref<2x1024xf32, #tpu.memory_space<vmem>>, vector<2x1024xf32>
    %c0_1 = arith.constant 0 : index
    %c0_2 = arith.constant 0 : index
    %1 = vector.load %arg2[%c0_1, %c0_2] : memref<2x1024xf32, #tpu.memory_space<vmem>>, vector<2x1024xf32>
    tpu.vector_store %arg2[%c0_1, %c0_2], %0 {strides = array<i32>} : memref<2x1024xf32, #tpu.memory_space<vmem>>, vector<2x1024xf32>,
    return
  }
  func.func @transform_0(%arg0: i32) -> (i32, i32) {
    %c0_i32 = arith.constant 0 : i32
    %c0_i32_0 = arith.constant 0 : i32
    return %arg0, %c0_i32 : i32, i32
  }
  func.func @transform_1(%arg0: i32) -> (i32, i32) {
    %c0_i32 = arith.constant 0 : i32
    %c0_i32_0 = arith.constant 0 : i32
    return %arg0, %c0_i32 : i32, i32
  }
}

</mosaic_0001>

<bundles_post_ra>
// kernel: identity_pallas.1
= control target key start
LH: loop header
LB: loop body
LE: loop exit
PB: predicated region body
PF: predicated region fallthrough
CT: control target
= control target key end

     0   :  { %s38_s0 = inlined_call_operand.vmem [shape: f32[2,1024], index: 0, kind: input, shape index: {}, may-alias: {0,1}]   ;;  %s39_s1 = inlined_call_operand.vmem [shape: f32[2,1024], index: 1, kind: output, shape index: {}, may-alias: {0,1}]  }
   0x1   :  { %v8_v0 = vld [vmem:[%s38_s0] sm:$0xff]  ;;  %v9_v1 = vld [vmem:[%s38_s0 + $0x8] sm:$0xff] }
   0x2   :  { %10 = vst [vmem:[%s39_s1] sm:$0xff] %v8_v0  ;;  %11 = vst [vmem:[%s39_s1 + $0x8] sm:$0xff] %v9_v1 }

</bundles_post_ra>
